<compile_context>
chip_gen: v6e
topology: v6e:2x2x1
jax: 0.10.0
libtpu: 0.0.40
codegen_flags: <defaults>
</compile_context>

<pallas_src>
from functools import partial

import numpy as np
import jax
import jax.numpy as jnp
from jax import lax
from jax.experimental import pallas as pl
from jax.experimental.pallas import tpu as pltpu

_LANE = 128


# --------------------------------------------------------------------------- parameters
def _gaussian_taps(kernel_size: int, sigma: float) -> np.ndarray:
    """Normalized 1-D Gaussian taps g with kernel2d == outer(g, g); matches
    AntiAliasInterpolation2d._gaussian_kernel2d up to f32 rounding."""
    ax = np.arange(kernel_size, dtype=np.float64)
    mean = (kernel_size - 1) / 2.0
    g = np.exp(-((ax - mean) ** 2) / (2.0 * sigma ** 2))
    return g / g.sum()


def _banded_blur_downsample_matrix(n_in, stride, g, ka, n_out_pad=None) -> np.ndarray:
    """(n_out_pad, n_in) matrix encoding: zero-pad by ka, 'valid' 1-D conv with taps g, keep
    every `stride`-th element.  Rows >= n_out (lane padding) are exact zeros."""
    K = g.shape[0]
    n_out = (n_in + stride - 1) // stride          # == len(range(0, n_in, stride))
    if n_out_pad is None:
        n_out_pad = n_out
    A = np.zeros((n_out_pad, n_in), dtype=np.float64)
    for r in range(n_out):
        base = r * stride - ka
        for t in range(K):
            h = base + t
            if 0 <= h < n_in:                      # taps falling outside hit exact zeros
                A[r, h] = g[t]
    return A.astype(np.float32)


def _anti_alias_plan(scale, H, W):
    """Compile-time plan for one scale: output sizes and the two banded matrices."""
    sigma = (1.0 / scale - 1.0) / 2.0
    ksize = 2 * round(sigma * 4) + 1
    ka = ksize // 2                                 # ksize odd -> kb == ka
    stride = int(1.0 / scale)                       # matches the module's int(1/scale)
    g = _gaussian_taps(ksize, sigma)
    H_out = (H + stride - 1) // stride
    W_out = (W + stride - 1) // stride
    W_out_p = ((W_out + _LANE - 1) // _LANE) * _LANE   # lane-dense stores; pad sliced off later
    ah = _banded_blur_downsample_matrix(H, stride, g, ka)                # (H_out, H)
    awt = _banded_blur_downsample_matrix(W, stride, g, ka, W_out_p).T    # (W, W_out_p)
    return H_out, W_out, W_out_p, ah, awt


# --------------------------------------------------------------------------- kernel
def _make_fused_kernel(nc_block: int, n_scales: int):
    """One grid step: nc_block (H, W) planes -> one (H_out_s, W_out_p_s) block per scale,
    via two batched MXU matmuls per scale (pad + stride baked into the matrices)."""

    def kernel(*refs):
        x_ref = refs[0]                              # (nc_block, H, W)
        mats = refs[1:1 + 2 * n_scales]              # ah_s (H_out, H), awt_s (W, W_out_p)
        outs = refs[1 + 2 * n_scales:]               # (nc_block, H_out_s, W_out_p_s)

        x = x_ref[...]                               # bf16 or f32, fed to the MXU as-is
        for s in range(n_scales):                    # static, tiny (2-3 scales)
            ah = mats[2 * s][...]
            awt = mats[2 * s + 1][...]
            ahb = jnp.broadcast_to(ah[None], (nc_block,) + ah.shape)
            awtb = jnp.broadcast_to(awt[None], (nc_block,) + awt.shape)
            # vertical pass: (nc,H_out,H) x (nc,H,W) -> (nc,H_out,W), f32 accumulate on MXU
            t = lax.dot_general(ahb, x, (((2,), (1,)), ((0,), (0,))),
                                preferred_element_type=jnp.float32).astype(x.dtype)
            # horizontal pass: (nc,H_out,W) x (nc,W,W_out_p) -> (nc,H_out,W_out_p)
            y = lax.dot_general(t, awtb, (((2,), (1,)), ((0,), (0,))),
                                preferred_element_type=jnp.float32)
            outs[s][...] = y.astype(outs[s].dtype)

    return kernel


# --------------------------------------------------------------------------- sizing
def _vmem_budget():
    """(physical VMEM bytes, scoped vmem_limit_bytes to request)."""
    cap = None
    try:
        cap = getattr(pltpu.get_tpu_info(), "vmem_capacity_bytes", None)
    except Exception:
        cap = None
    if not cap:
        cap = 64 * 1024 * 1024                      # conservative (v7x floor)
    limit = min(32 * 1024 * 1024, max(8 * 1024 * 1024, cap // 3))
    return int(cap), int(limit)


def _per_plane_vmem_bytes(H, W, plan, in_isz, out_isz):
    """VMEM working set per plane-in-block (double-buffered blocks + f32 intermediates +
    broadcast matmul operands)."""
    b = 2 * H * W * in_isz                          # input block (double-buffered)
    for (H_out, _W_out, W_out_p, _ah, _awt) in plan:
        b += H_out * W * 4                          # vertical-pass intermediate (f32)
        b += H_out * W_out_p * 4                    # result before cast (f32)
        b += 2 * H_out * W_out_p * out_isz          # output block (double-buffered)
        b += (H_out * H + W * W_out_p) * in_isz     # broadcast matmul operands
    return b


def _pick_nc_block(N, per_plane_bytes, budget_bytes, target_grid=4):
    cap_vmem = max(1, budget_bytes // max(per_plane_bytes, 1))
    cap_grid = max(1, -(-N // target_grid))         # keep >= ~target_grid pipelined steps
    cap = max(1, min(N, cap_vmem, cap_grid))
    for cand in range(cap, 0, -1):                  # largest divisor of N -> no ragged tail
        if N % cand == 0:
            return cand
    return 1


# --------------------------------------------------------------------------- pyramid
@partial(jax.jit, static_argnames=("scales",))
def _pyramid_impl(x, scales):
    B, C, H, W = x.shape
    out_dict = {}

    work_scales = []
    for scale in scales:
        key = "prediction_" + str(scale).replace("-", ".")
        if float(scale) == 1.0:
            out_dict[key] = x                        # reference returns the input unchanged
        else:
            work_scales.append((key, scale))
    if not work_scales:
        return out_dict

    # Feed bf16 straight to the MXU; otherwise run the kernel in f32.
    if x.dtype == jnp.bfloat16:
        work_dtype = jnp.bfloat16
    else:
        work_dtype = jnp.float32
    kernel_out_dtype = x.dtype if x.dtype in (jnp.float32, jnp.bfloat16) else work_dtype

    N = B * C
    xw = x.astype(work_dtype).reshape(N, H, W)
    in_isz = jnp.dtype(work_dtype).itemsize
    out_isz = jnp.dtype(kernel_out_dtype).itemsize

    plan = [_anti_alias_plan(scale, H, W) for _, scale in work_scales]
    S = len(plan)

    cap, vmem_limit = _vmem_budget()
    fixed = sum(2 * (H_out * H + W * W_out_p) * in_isz
                for (H_out, _wo, W_out_p, _a, _b) in plan)
    per_plane = _per_plane_vmem_bytes(H, W, plan, in_isz, out_isz)
    budget = max(per_plane, (vmem_limit * 3) // 4 - fixed)   # headroom for compiler scratch
    nc = _pick_nc_block(N, per_plane, budget)
    vmem_limit = int(min(0.9 * cap, max(vmem_limit, nc * per_plane + fixed + (2 << 20))))

    mats = []
    in_specs = [pl.BlockSpec((nc, H, W), lambda i: (i, 0, 0))]
    out_shapes = []
    out_specs = []
    for (H_out, _W_out, W_out_p, ah, awt) in plan:
        mats.append(jnp.asarray(ah, dtype=work_dtype))
        mats.append(jnp.asarray(awt, dtype=work_dtype))
        in_specs.append(pl.BlockSpec((H_out, H), lambda i: (0, 0)))
        in_specs.append(pl.BlockSpec((W, W_out_p), lambda i: (0, 0)))
        out_shapes.append(jax.ShapeDtypeStruct((N, H_out, W_out_p), kernel_out_dtype))
        out_specs.append(pl.BlockSpec((nc, H_out, W_out_p), lambda i: (i, 0, 0)))

    outs = pl.pallas_call(
        _make_fused_kernel(nc, S),
        out_shape=tuple(out_shapes),
        grid=(N // nc,),
        in_specs=in_specs,
        out_specs=tuple(out_specs),
        compiler_params=pltpu.CompilerParams(
            dimension_semantics=("parallel",),
            vmem_limit_bytes=vmem_limit,
        ),
    )(xw, *mats)

    for (key, _scale), (H_out, W_out, _wp, _a, _b), o in zip(work_scales, plan, outs):
        out_dict[key] = o[:, :, :W_out].reshape(B, C, H_out, W_out).astype(x.dtype)
    return out_dict


def image_pyramide(x: jax.Array, scales) -> dict:
    """Pallas equivalent of ImagePyramide.forward (all scales fused in one kernel)."""
    return _pyramid_impl(x, scales=tuple(scales))


# --------------------------------------------------------------------------- reference
def anti_alias_interp2d_ref(x, scale):
    """Pure-JAX reference (lax depthwise conv, f32-highest precision)."""
    if scale == 1.0:
        return x
    sigma = (1.0 / scale - 1.0) / 2.0
    ksize = 2 * round(sigma * 4) + 1
    ka = ksize // 2
    g = _gaussian_taps(ksize, sigma)
    k2 = np.outer(g, g).astype(np.float32)
    B, C, H, W = x.shape
    w = jnp.asarray(k2)[None, None].repeat(C, axis=0)        # (C, 1, K, K) depthwise
    xp = jnp.pad(x, ((0, 0), (0, 0), (ka, ka), (ka, ka)))
    out = lax.conv_general_dilated(
        xp, w, window_strides=(1, 1), padding="VALID",
        dimension_numbers=("NCHW", "OIHW", "NCHW"),
        feature_group_count=C,
        precision=lax.Precision.HIGHEST)
    s = int(1.0 / scale)
    return out[:, :, ::s, ::s]


# --------------------------------------------------------------------------- main
if __name__ == "__main__":
    key = jax.random.PRNGKey(0)
    B, C, H, W = 2, 3, 64, 64
    x = jax.random.normal(key, (B, C, H, W), dtype=jnp.float32)

    scales = (1, 0.5, 0.25)
    outs = image_pyramide(x, scales)
    jax.block_until_ready(outs)

    # Sanity check against a pure-JAX f32-HIGHEST reference.  The kernel intentionally uses
    # default MXU precision (per perf review), so tolerance allows bf16 operand rounding.
    for scale in scales:
        got = outs["prediction_" + str(scale).replace("-", ".")]
        ref = anti_alias_interp2d_ref(x, scale)
        assert got.shape == ref.shape, (got.shape, ref.shape)
        np.testing.assert_allclose(np.asarray(got), np.asarray(ref), rtol=2e-2, atol=2e-2)

    print("KERNEL_OK")
</pallas_src>

<mosaic_0001>
module attributes {stable_mosaic.version = 11 : i64} {
  func.func @kernel(%arg0: i32, %arg1: memref<2x64x64xf32, #tpu.memory_space<vmem>>, %arg2: memref<32x64xf32, #tpu.memory_space<vmem>>, %arg3: memref<64x128xf32, #tpu.memory_space<vmem>>, %arg4: memref<16x64xf32, #tpu.memory_space<vmem>>, %arg5: memref<64x128xf32, #tpu.memory_space<vmem>>, %arg6: memref<2x32x128xf32, #tpu.memory_space<vmem>>, %arg7: memref<2x16x128xf32, #tpu.memory_space<vmem>>) attributes {dimension_semantics = [#tpu.dimension_semantics<parallel>], iteration_bounds = array<i64: 3>, scalar_prefetch = 0 : i64, scratch_operands = 0 : i64, tpu.core_type = #tpu.core_type<tc>, window_params = [{transform_indices = @transform_0, window_bounds = array<i64: 2, 64, 64>}, {pipeline_mode = #tpu.pipeline_mode<synchronous>, transform_indices = @transform_1, window_bounds = array<i64: 32, 64>}, {pipeline_mode = #tpu.pipeline_mode<synchronous>, transform_indices = @transform_2, window_bounds = array<i64: 64, 128>}, {pipeline_mode = #tpu.pipeline_mode<synchronous>, transform_indices = @transform_3, window_bounds = array<i64: 16, 64>}, {pipeline_mode = #tpu.pipeline_mode<synchronous>, transform_indices = @transform_4, window_bounds = array<i64: 64, 128>}, {transform_indices = @transform_5, window_bounds = array<i64: 2, 32, 128>}, {transform_indices = @transform_6, window_bounds = array<i64: 2, 16, 128>}]} {
    %c0 = arith.constant 0 : index
    %c0_0 = arith.constant 0 : index
    %c0_1 = arith.constant 0 : index
    %0 = vector.load %arg1[%c0, %c0_0, %c0_1] : memref<2x64x64xf32, #tpu.memory_space<vmem>>, vector<2x64x64xf32>
    %c0_2 = arith.constant 0 : index
    %c0_3 = arith.constant 0 : index
    %1 = vector.load %arg2[%c0_2, %c0_3] : memref<32x64xf32, #tpu.memory_space<vmem>>, vector<32x64xf32>
    %c0_4 = arith.constant 0 : index
    %c0_5 = arith.constant 0 : index
    %2 = vector.load %arg3[%c0_4, %c0_5] : memref<64x128xf32, #tpu.memory_space<vmem>>, vector<64x128xf32>
    %3 = vector.shape_cast %1 : vector<32x64xf32> to vector<1x32x64xf32>
    %4 = vector.shape_cast %3 : vector<1x32x64xf32> to vector<1x32x64xf32>
    %5 = vector.broadcast %4 : vector<1x32x64xf32> to vector<2x32x64xf32>
    %6 = vector.shape_cast %2 : vector<64x128xf32> to vector<1x64x128xf32>
    %7 = vector.shape_cast %6 : vector<1x64x128xf32> to vector<1x64x128xf32>
    %8 = vector.broadcast %7 : vector<1x64x128xf32> to vector<2x64x128xf32>
    %cst = arith.constant dense<0.000000e+00> : vector<2x32x64xf32>
    %9 = tpu.matmul %5, %0, %cst {dimension_numbers = #tpu.dot_dimension_numbers<[2], [1], [1], [2], [0, 0, 0, 1, 1, 2], [0], [0]>} : vector<2x32x64xf32>, vector<2x64x64xf32>, vector<2x32x64xf32> -> vector<2x32x64xf32>
    %cst_6 = arith.constant dense<0.000000e+00> : vector<2x32x128xf32>
    %10 = tpu.matmul %9, %8, %cst_6 {dimension_numbers = #tpu.dot_dimension_numbers<[2], [1], [1], [2], [0, 0, 0, 1, 1, 2], [0], [0]>} : vector<2x32x64xf32>, vector<2x64x128xf32>, vector<2x32x128xf32> -> vector<2x32x128xf32>
    %c0_7 = arith.constant 0 : index
    %c0_8 = arith.constant 0 : index
    %c0_9 = arith.constant 0 : index
    %11 = vector.load %arg6[%c0_7, %c0_8, %c0_9] : memref<2x32x128xf32, #tpu.memory_space<vmem>>, vector<2x32x128xf32>
    tpu.vector_store %arg6[%c0_7, %c0_8, %c0_9], %10 {strides = array<i32>} : memref<2x32x128xf32, #tpu.memory_space<vmem>>, vector<2x32x128xf32>,
    %c0_10 = arith.constant 0 : index
    %c0_11 = arith.constant 0 : index
    %12 = vector.load %arg4[%c0_10, %c0_11] : memref<16x64xf32, #tpu.memory_space<vmem>>, vector<16x64xf32>
    %c0_12 = arith.constant 0 : index
    %c0_13 = arith.constant 0 : index
    %13 = vector.load %arg5[%c0_12, %c0_13] : memref<64x128xf32, #tpu.memory_space<vmem>>, vector<64x128xf32>
    %14 = vector.shape_cast %12 : vector<16x64xf32> to vector<1x16x64xf32>
    %15 = vector.shape_cast %14 : vector<1x16x64xf32> to vector<1x16x64xf32>
    %16 = vector.broadcast %15 : vector<1x16x64xf32> to vector<2x16x64xf32>
    %17 = vector.shape_cast %13 : vector<64x128xf32> to vector<1x64x128xf32>
    %18 = vector.shape_cast %17 : vector<1x64x128xf32> to vector<1x64x128xf32>
    %19 = vector.broadcast %18 : vector<1x64x128xf32> to vector<2x64x128xf32>
    %cst_14 = arith.constant dense<0.000000e+00> : vector<2x16x64xf32>
    %20 = tpu.matmul %16, %0, %cst_14 {dimension_numbers = #tpu.dot_dimension_numbers<[2], [1], [1], [2], [0, 0, 0, 1, 1, 2], [0], [0]>} : vector<2x16x64xf32>, vector<2x64x64xf32>, vector<2x16x64xf32> -> vector<2x16x64xf32>
    %cst_15 = arith.constant dense<0.000000e+00> : vector<2x16x128xf32>
    %21 = tpu.matmul %20, %19, %cst_15 {dimension_numbers = #tpu.dot_dimension_numbers<[2], [1], [1], [2], [0, 0, 0, 1, 1, 2], [0], [0]>} : vector<2x16x64xf32>, vector<2x64x128xf32>, vector<2x16x128xf32> -> vector<2x16x128xf32>
    %c0_16 = arith.constant 0 : index
    %c0_17 = arith.constant 0 : index
    %c0_18 = arith.constant 0 : index
    %22 = vector.load %arg7[%c0_16, %c0_17, %c0_18] : memref<2x16x128xf32, #tpu.memory_space<vmem>>, vector<2x16x128xf32>
    tpu.vector_store %arg7[%c0_16, %c0_17, %c0_18], %21 {strides = array<i32>} : memref<2x16x128xf32, #tpu.memory_space<vmem>>, vector<2x16x128xf32>,
    return
  }
  func.func @transform_0(%arg0: i32) -> (i32, i32, i32) {
    %c0_i32 = arith.constant 0 : i32
    %c0_i32_0 = arith.constant 0 : i32
    %c0_i32_1 = arith.constant 0 : i32
    return %arg0, %c0_i32, %c0_i32_0 : i32, i32, i32
  }
  func.func @transform_1(%arg0: i32) -> (i32, i32) {
    %c0_i32 = arith.constant 0 : i32
    %c0_i32_0 = arith.constant 0 : i32
    %c0_i32_1 = arith.constant 0 : i32
    return %c0_i32, %c0_i32_0 : i32, i32
  }
  func.func @transform_2(%arg0: i32) -> (i32, i32) {
    %c0_i32 = arith.constant 0 : i32
    %c0_i32_0 = arith.constant 0 : i32
    %c0_i32_1 = arith.constant 0 : i32
    return %c0_i32, %c0_i32_0 : i32, i32
  }
  func.func @transform_3(%arg0: i32) -> (i32, i32) {
    %c0_i32 = arith.constant 0 : i32
    %c0_i32_0 = arith.constant 0 : i32
    %c0_i32_1 = arith.constant 0 : i32
    return %c0_i32, %c0_i32_0 : i32, i32
  }
  func.func @transform_4(%arg0: i32) -> (i32, i32) {
    %c0_i32 = arith.constant 0 : i32
    %c0_i32_0 = arith.constant 0 : i32
    %c0_i32_1 = arith.constant 0 : i32
    return %c0_i32, %c0_i32_0 : i32, i32
  }
  func.func @transform_5(%arg0: i32) -> (i32, i32, i32) {
    %c0_i32 = arith.constant 0 : i32
    %c0_i32_0 = arith.constant 0 : i32
    %c0_i32_1 = arith.constant 0 : i32
    return %arg0, %c0_i32, %c0_i32_0 : i32, i32, i32
  }
  func.func @transform_6(%arg0: i32) -> (i32, i32, i32) {
    %c0_i32 = arith.constant 0 : i32
    %c0_i32_0 = arith.constant 0 : i32
    %c0_i32_1 = arith.constant 0 : i32
    return %arg0, %c0_i32, %c0_i32_0 : i32, i32, i32
  }
}

</mosaic_0001>

<bundles_post_ra>
// kernel: _pyramid_impl.1
= control target key start
LH: loop header
LB: loop body
LE: loop exit
PB: predicated region body
PF: predicated region fallthrough
CT: control target
= control target key end

     0   :  { %12 = vsyncpa [#allocation3], 0  ;;  %s2353_s0 = inlined_call_operand.hbm [shape: f32[6,64,64], index: 0, kind: input, shape index: {}]   ;;  %s2354_s1 = inlined_call_operand.hbm [shape: f32[32,64], index: 1, kind: input, shape index: {}]   ;;  %s2355_s2 = inlined_call_operand.hbm [shape: f32[64,128], index: 2, kind: input, shape index: {}]   ;;  %s2356_s3 = inlined_call_operand.hbm [shape: f32[16,64], index: 3, kind: input, shape index: {}]   ;;  %s2357_s4 = inlined_call_operand.hbm [shape: f32[64,128], index: 4, kind: input, shape index: {}]   ;;  %s2358_s5 = inlined_call_operand.hbm [shape: f32[6,32,128], index: 5, kind: output, shape index: {0}]   ;;  %s2359_s6 = inlined_call_operand.hbm [shape: f32[6,16,128], index: 6, kind: output, shape index: {1}]  }
   0x1   :  { %14 = vsyncpa [#allocation3 + $0x1], 0 }
   0x2   :  { %15 = vsyncpa [#allocation6], 0 }
   0x3   :  { %16 = vsyncpa [#allocation9], 0 }
   0x4   :  { %17 = vsyncpa [#allocation4], 0 }
   0x5   :  { %19 = vsyncpa [#allocation4 + $0x1], 0 }
   0x6   :  { %20 = vsyncpa [#allocation13], 0 }
   0x7   :  { %22 = vsyncpa [#allocation13 + $0x1], 0  ;;  %s1957_s21 = smov 0   ;;  %s1959_s22 = smov 0  }
   0x8   :  { %s1961_s23 = smov 0   ;;  %s1963_s24 = smov 0  }
   0x9 LB: > { %s1978_s25 = sadd.s32 4294967295, %s1909_s24   ;;  %s1268_s26 = sadd.s32 4294967294, %s1909_s24   ;;  %s1909_s24 = sphi %s1963_s24, %s2385_s24   ;;  %s1905_s23 = sphi %s1961_s23, %s2384_s23   ;;  %s1901_s22 = sphi %s1959_s22, %s2383_s22   ;;  %s1897_s21 = sphi %s1957_s21, %s2382_s21  }
   0xa   : > { %p48_p0 = scmp.ne.s32.totalorder %s1901_s22, %s1897_s21  ;;  %p2360_p1 = scmp.eq.s32.totalorder %s1978_s25, 0 }
   0xb   : > { %p156_p2 = scmp.eq.s32.totalorder %s1978_s25, 2  ;;  %p162_p3 = scmp.eq.s32.totalorder %s1268_s26, 2 }
   0xc   : > { %p1987_p4 = por %p2360_p1, %p48_p0  ;;  %p1269_p5 = scmp.ge.s32.totalorder %s1909_s24, 1 }
   0xd   : > { %p1992_p6 = por %p162_p3, %p48_p0  ;;  %p195_p7 = scmp.lt.s32.totalorder %s1909_s24, 4 }
   0xe   : > { %s2366_s27 = scalar_select %p1987_p4, 1, 0 }
   0xf   : > { %s2367_s28 = scalar_select %p1992_p6, 1, 0 }
  0x10   : > { %p1997_p8 = pnand %p1269_p5, %p195_p7  ;;  %s1911_s30 = smov [#allocation5]  }
  0x11   : > { %s207_s7 = sshll.u32 %s1911_s30, 4  ;;  %s1912_s9 = smov [#allocation8]   ;;  %s208_s7 = int_to_ptr.vmem [resolvable:$true] %s207_s7 }
  0x12   : > { %s2368_s29 = scalar_select %p1997_p8, 1, 0 }
  0x13   : > { %p1601_p9 = pneg %p1997_p8  ;;  %s233_s10 = sshll.u32 %s1912_s9, 4  ;;  %s234_s10 = int_to_ptr.vmem [resolvable:$true] %s233_s10 }
  0x14   : > { %s1913_s11 = smov [#allocation7]   ;;  %s1686_s13 = scalar_lea.vmem %s208_s7, 512 }
  0x15   : > { %p2005_p10 = pnand %p1601_p9, %p2360_p1  ;;  %s220_s12 = sshll.u32 %s1913_s11, 4  ;;  %s221_s12 = int_to_ptr.vmem [resolvable:$true] %s220_s12 }
  0x16   : > { %p1687_p12 = scmp.ne.s32.totalorder %s208_s7, %s1686_s13  ;;  %p1694_p3 = scmp.lt.s32.totalorder %s208_s7, %s208_s7 }
  0x17   : > { %p1677_p11 = pneg %p2005_p10  ;;  %p1695_p5 = scmp.lt.s32.totalorder %s1686_s13, %s1686_s13 }
  0x19   : > { %p1689_p13 = pnand %p1687_p12, %p1677_p11  ;;  %p1696_p7 = por %p1695_p5, %p1694_p3 }
  0x1b   : > { %p1690_p0 = pneg %p1689_p13 }
  0x1d   : > { %p1697_p9 = pnand %p1696_p7, %p1690_p0 }
  0x1f   : > { %1700 = shalt.err (!%p1697_p9)
}
  0x20   : > { %s2361_s14 = smov 128   ;;  %s2362_s15 = smov 8  }
  0x21   : > { %1604 = dma.hbm_to_vmem [thread:$0]  (!%p2005_p10), %s2354_s1, 512, %s208_s7, [#allocation6], %s2361_s14, %s2361_s14, %s2362_s15  }
  0x22   : > { %s1712_s18 = scalar_lea.vmem %s234_s10, 256  ;;  %p1720_p0 = scmp.lt.s32.totalorder %s234_s10, %s234_s10 }
  0x23   : > { %p1713_p12 = scmp.ne.s32.totalorder %s234_s10, %s1712_s18  ;;  %p1721_p5 = scmp.lt.s32.totalorder %s1712_s18, %s1712_s18 }
  0x25   : > { %p1715_p13 = pnand %p1713_p12, %p1677_p11  ;;  %p1722_p7 = por %p1721_p5, %p1720_p0 }
  0x27   : > { %p1716_p3 = pneg %p1715_p13 }
  0x29   : > { %p1723_p9 = pnand %p1722_p7, %p1716_p3 }
  0x2b   : > { %1726 = shalt.err (!%p1723_p9)
}
  0x2c   : > { %1610 = dma.hbm_to_vmem [thread:$0]  (!%p2005_p10), %s2356_s3, 256, %s234_s10, [#allocation9], %s2361_s14, %s2361_s14, %s2362_s15  }
  0x2d   : > { %s1738_s26 = scalar_lea.vmem %s221_s12, 1024  ;;  %p1746_p0 = scmp.lt.s32.totalorder %s221_s12, %s221_s12 }
  0x2e   : > { %p1739_p1 = scmp.ne.s32.totalorder %s221_s12, %s1738_s26  ;;  %p1747_p3 = scmp.lt.s32.totalorder %s1738_s26, %s1738_s26 }
  0x30   : > { %p1741_p12 = pnand %p1739_p1, %p1677_p11  ;;  %p1748_p5 = por %p1747_p3, %p1746_p0 }
  0x32   : > { %p1742_p13 = pneg %p1741_p12 }
  0x34   : > { %p1749_p7 = pnand %p1748_p5, %p1742_p13 }
  0x36   : > { %1752 = shalt.err (!%p1749_p7)
}
  0x37   : > { %1607 = dma.hbm_to_vmem [thread:$0]  (!%p2005_p10), %s2355_s2, 1024, %s221_s12, [#allocation6], %s2361_s14, %s2361_s14, %s2362_s15  }
  0x38   : > { %s1916_s9 = smov [#allocation10]  }
  0x39   : > { %s246_s10 = sshll.u32 %s1916_s9, 4  ;;  %s247_s10 = int_to_ptr.vmem [resolvable:$true] %s246_s10 }
  0x3a   : > { %s1764_s11 = scalar_lea.vmem %s247_s10, 1024  ;;  %p1772_p13 = scmp.lt.s32.totalorder %s247_s10, %s247_s10 }
  0x3b   : > { %p1765_p1 = scmp.ne.s32.totalorder %s247_s10, %s1764_s11  ;;  %p1773_p0 = scmp.lt.s32.totalorder %s1764_s11, %s1764_s11 }
  0x3d   : > { %p1767_p9 = pnand %p1765_p1, %p1677_p11  ;;  %p1774_p3 = por %p1773_p0, %p1772_p13 }
  0x3f   : > { %p1768_p12 = pneg %p1767_p9 }
  0x41   : > { %p1775_p5 = pnand %p1774_p3, %p1768_p12 }
  0x43   : > { %1778 = shalt.err (!%p1775_p5)
}
  0x44   : > { %1613 = dma.hbm_to_vmem [thread:$0]  (!%p2005_p10), %s2357_s4, 1024, %s247_s10, [#allocation9], %s2361_s14, %s2361_s14, %s2362_s15  }
  0x45   : > { %s2056_s16 = sadd.s32 1, %s1909_s24   ;;  %s35_s8 = sadd.s32 1, %s1905_s23 }
  0x46   : > { %s32_s17 = ssub.s32 %s1909_s24, %s2056_s16  ;;  %p42_p11 = scmp.ne.s32.totalorder %s1905_s23, %s1901_s22 }
  0x47   : > { %p33_p7 = scmp.eq.s32.totalorder %s32_s17, 0  ;;  %p43_p1 = scmp.eq.s32.totalorder %s1909_s24, 0 }
  0x48   : > { %p2066_p9 = por %p156_p2, %p42_p11  ;;  %p1629_p12 = scmp.lt.s32.totalorder %s1909_s24, 3 }
  0x49   : > { %s2072_s19 = scalar_select %p33_p7, %s1905_s23, %s35_s8  }
  0x4a   : > { %s2370_s18 = scalar_select %p2066_p9, 1, 0 }
  0x4b   : > { %p44_p13 = por %p43_p1, %p42_p11  ;;  %s260_s20 = sand.u32 1, %s1905_s23  }
  0x4c   : > { %s1275_s26 = sshll.u32 %s260_s20, 7  ;;  %s1322_s30 = sshll.u32 %s1909_s24, 11 }
  0x4d   : > { %s2079_s10 = scalar_lea.hbm %s2353_s0, %s1322_s30  ;;  %s264_s11 = scalar_lea.vmem [#allocation2], %s1275_s26 }
  0x4e   : > { %s272_s12 = sshll.u32 %s264_s11, 4  ;;  %p2083_p2 = pnand %p1629_p12, %p44_p13  ;;  %s2081_s12 = int_to_ptr.vmem [resolvable:$true] %s272_s12 }
  0x4f   : > { %s2087_s8 = scalar_lea.sflag [#allocation3], %s260_s20  ;;  %s1779_s17 = scalar_lea.hbm %s2079_s10, 2048 }
  0x50   : > { %p1780_p10 = scmp.ne.s32.totalorder %s2079_s10, %s1779_s17  ;;  %p1781_p0 = pneg %p2083_p2 }
  0x51   : > { %s1784_s26 = scalar_lea.hbm %s2353_s0, 6144  ;;  %p1785_p11 = scmp.lt.s32.totalorder %s2079_s10, %s2353_s0 }
  0x52   : > { %p1782_p3 = pnand %p1781_p0, %p1780_p10  ;;  %p1786_p7 = scmp.lt.s32.totalorder %s1784_s26, %s1779_s17 }
  0x54   : > { %p1783_p5 = pneg %p1782_p3  ;;  %p1787_p1 = por %p1786_p7, %p1785_p11 }
  0x56   : > { %p1788_p12 = pnand %p1787_p1, %p1783_p5 }
  0x58   : > { %1791 = shalt.err (!%p1788_p12)
}
  0x59   : > { %s1792_s20 = scalar_lea.vmem %s2081_s12, 2048  ;;  %s1917_s14 = smov [#allocation2]  }
  0x5a   : > { %p1793_p13 = scmp.ne.s32.totalorder %s2081_s12, %s1792_s20  ;;  %s1797_s15 = sshll.u32 %s1917_s14, 4  ;;  %s1798_s15 = int_to_ptr.vmem [resolvable:$false] %s1797_s15 }
  0x5b   : > { %s1799_s30 = scalar_lea.vmem %s1798_s15, 4096  ;;  %p1800_p3 = scmp.lt.s32.totalorder %s2081_s12, %s1798_s15 }
  0x5c   : > { %p1795_p6 = pnand %p1793_p13, %p1781_p0  ;;  %p1801_p9 = scmp.lt.s32.totalorder %s1799_s30, %s1792_s20 }
  0x5e   : > { %p1796_p10 = pneg %p1795_p6  ;;  %p1802_p4 = por %p1801_p9, %p1800_p3 }
  0x60   : > { %p1803_p8 = pnand %p1802_p4, %p1796_p10 }
  0x62   : > { %1806 = shalt.err (!%p1803_p8)
}
  0x63   : > { %s2372_s17 = smov 8   ;;  %s2373_s7 = smov 128  }
  0x64   : > { %1617 = dma.hbm_to_vmem [thread:$0]  (!%p2083_p2), %s2079_s10, 2048, %s2081_s12, %s2087_s8, %s2373_s7, %s2373_s7, %s2372_s17  }
  0x65   : > { %p2374_p6 = scmp.ne.s32.totalorder %s2368_s29, 0 }
  0x66   : > { %s2114_s14 = sand.u32 (!%p2374_p6), 1, %s1901_s22   ;;  %p2375_p4 = scmp.ne.s32.totalorder (!%p2374_p6), %s2366_s27, 0 }
  0x67   : > { %284 = sbr.rel (%p2374_p6) target bundleno = 753 (0x2f1), region = 40  ;;  %s1280_s15 = sshll.u32 (!%p2374_p6), %s2114_s14, 7 }
  0x68   : > { %s287_s26 = scalar_lea.sflag (!%p2374_p6), [#allocation3], %s2114_s14  ;;  %s2118_s9 = scalar_lea.vmem (!%p2374_p6), [#allocation2], %s1280_s15 }
  0x6c   : > { %1876 = dma.done.wait (%p2375_p4), %s287_s26, 2048  }
  0x6d   : > { %1878 = vsyncadd (%p2375_p4), %s287_s26, 4294965248  ;;  %p2376_p8 = scmp.eq.s32.totalorder %s1978_s25, 0 }
  0x6f   : > { %1880 = dma.done.wait (%p2376_p8), [#allocation6], 1536   ;;  %p2377_p9 = pmov %p2376_p8 }
  0x70   : > { %p2378_p2 = pmov %p2376_p8 }
  0x71   : > { %1882 = vsyncadd (%p2377_p9), [#allocation6], 4294965760 }
  0x72   : > { %1884 = dma.done.wait (%p2378_p2), [#allocation9], 1280   ;;  %p2379_p0 = pmov %p2378_p2 }
  0x73   : > { %v2133_v0 = vld [vmem:[%s2118_s9 + $0x38] sm:$0xff]  ;;  %v2139_v2 = vld [vmem:[%s2118_s9 + $0x30] sm:$0xff]  ;;  %v2149_v4 = vld [vmem:[%s2118_s9 + $0x28] sm:$0xff]  ;;  %vm371_vm0 = vcmask 523264   ;;  %s1285_s27 = sshll.u32 %s2114_s14, 6  ;;  %s1324_s12 = sshll.u32 %s1978_s25, 10 }
  0x74   : > { %1886 = vsyncadd (%p2379_p0), [#allocation9], 4294966016  ;;  %v2136_v1 = vld [vmem:[%s2118_s9 + $0x78] sm:$0xff]  ;;  %1415 = vmatprep.subr.mxu0 %v2133_v0  ;;  %v2144_v3 = vld [vmem:[%s2118_s9 + $0x70] sm:$0xff]  ;;  %s332_s29 = scalar_lea.vmem [#allocation11], %s1285_s27  ;;  %s2275_s11 = scalar_lea.hbm %s2358_s5, %s1324_s12 }
  0x75   : > { %1437 = vmatprep.subr.mxu1 %v2136_v1  ;;  %1416 = vmatpush3.msra.mxu0 %v2133_v0  ;;  %v2152_v5 = vld [vmem:[%s2118_s9 + $0x68] sm:$0xff]  ;;  %v2159_v6 = vld [vmem:[%s2118_s9 + $0x20] sm:$0xff]  ;;  %v2169_v8 = vld [vmem:[%s2118_s9 + $0x18] sm:$0xff]  ;;  %s1108_s10 = sshll.u32 %s332_s29, 4  ;;  %s1089_s20 = scalar_lea.sflag [#allocation4], %s2114_s14  ;;  %s2269_s10 = int_to_ptr.vmem [resolvable:$true] %s1108_s10 }
  0x76   : > { %1438 = vmatpush3.msra.mxu1 %v2136_v1  ;;  %1417 = vmatprep.subr.mxu0 %v2139_v2  ;;  %v2162_v7 = vld [vmem:[%s2118_s9 + $0x60] sm:$0xff]  ;;  %v2172_v9 = vld [vmem:[%s2118_s9 + $0x58] sm:$0xff]  ;;  %v2179_v10 = vld [vmem:[%s2118_s9 + $0x10] sm:$0xff]  ;;  %s1807_s30 = scalar_lea.vmem %s2269_s10, 1024  ;;  %p2380_p11 = scmp.ne.s32.totalorder %s2370_s18, 0 }
  0x77   : > { %1439 = vmatprep.subr.mxu1 %v2144_v3  ;;  %1418 = vmatpush3.msra.mxu0 %v2139_v2  ;;  %v2182_v11 = vld [vmem:[%s2118_s9 + $0x50] sm:$0xff]  ;;  %v2189_v12 = vld [vmem:[%s2118_s9 + $0x8] sm:$0xff]  ;;  %v2199_v14 = vld [vmem:[%s2118_s9] sm:$0xff]  ;;  %p1808_p5 = scmp.ne.s32.totalorder %s2269_s10, %s1807_s30  ;;  %s1918_s17 = smov [#allocation11]  }
  0x78   : > { %1440 = vmatpush3.msra.mxu1 %v2144_v3  ;;  %1419 = vmatprep.subr.mxu0 %v2149_v4  ;;  %v2192_v13 = vld [vmem:[%s2118_s9 + $0x48] sm:$0xff]  ;;  %v2202_v15 = vld [vmem:[%s2118_s9 + $0x40] sm:$0xff]  ;;  %v361_v18 = vld [vmem:[#allocation5 + $0x10] sm:$0xff]  ;;  %s1811_s7 = sshll.u32 %s1918_s17, 4  ;;  %s1812_s7 = int_to_ptr.vmem [resolvable:$false] %s1811_s7 }
  0x79   : > { %1441 = vmatprep.subr.mxu1 %v2152_v5  ;;  %1420 = vmatpush3.msra.mxu0 %v2149_v4  ;;  %v359_v16 = vld [vmem:[#allocation5] sm:$0xff]  ;;  %v360_v17 = vld [vmem:[#allocation5 + $0x8] sm:$0xff]  ;;  %v370_v19 = vld [vmem:[#allocation7 + $0x38] sm:$0xff]  ;;  %p1809_p7 = pnand %p1808_p5, %p2380_p11  ;;  %s1813_s15 = scalar_lea.vmem %s1812_s7, 2048 }
  0x7a   : > { %1442 = vmatpush3.msra.mxu1 %v2152_v5  ;;  %1421 = vmatprep.subr.mxu0 %v2159_v6  ;;  %v362_v20 = vld [vmem:[#allocation5 + $0x18] sm:$0xff]  ;;  %v369_v21 = vld [vmem:[#allocation7 + $0x30] sm:$0xff]  ;;  %v368_v22 = vld [vmem:[#allocation7 + $0x28] sm:$0xff]  ;;  %p1814_p12 = scmp.lt.s32.totalorder %s2269_s10, %s1812_s7  ;;  %p1815_p13 = scmp.lt.s32.totalorder %s1813_s15, %s1807_s30 }
  0x7b   : > { %1443 = vmatprep.subr.mxu1 %v2162_v7  ;;  %1422 = vmatpush3.msra.mxu0 %v2159_v6  ;;  %v367_v23 = vld [vmem:[#allocation7 + $0x20] sm:$0xff]  ;;  %v366_v24 = vld [vmem:[#allocation7 + $0x18] sm:$0xff]  ;;  %v365_v25 = vld [vmem:[#allocation7 + $0x10] sm:$0xff]  ;;  %p1810_p1 = pneg %p1809_p7 }
  0x7c   : > { %1444 = vmatpush3.msra.mxu1 %v2162_v7  ;;  %1423 = vmatprep.subr.mxu0 %v2169_v8  ;;  %v364_v26 = vld [vmem:[#allocation7 + $0x8] sm:$0xff]  ;;  %v363_v27 = vld [vmem:[#allocation7] sm:$0xff]  ;;  %v763_v40 = vld [vmem:[#allocation10 + $0x28] sm:$0xff]  ;;  %p1816_p10 = por %p1815_p13, %p1814_p12 }
  0x7d   : > { %1445 = vmatprep.subr.mxu1 %v2172_v9  ;;  %1424 = vmatpush3.msra.mxu0 %v2169_v8  ;;  %v756_v36 = vld [vmem:[#allocation8] sm:$0xff]  ;;  %v757_v37 = vld [vmem:[#allocation8 + $0x8] sm:$0xff]  ;;  %v762_v41 = vld [vmem:[#allocation10 + $0x20] sm:$0xff] }
  0x7e   : > { %1446 = vmatpush3.msra.mxu1 %v2172_v9  ;;  %1425 = vmatprep.subr.mxu0 %v2179_v10  ;;  %v765_v38 = vld [vmem:[#allocation10 + $0x38] sm:$0xff]  ;;  %v764_v39 = vld [vmem:[#allocation10 + $0x30] sm:$0xff]  ;;  %v759_v44 = vld [vmem:[#allocation10 + $0x8] sm:$0xff]  ;;  %p1817_p3 = pnand %p1816_p10, %p1810_p1 }
  0x7f   : > { %1447 = vmatprep.subr.mxu1 %v2182_v11  ;;  %1426 = vmatpush3.msra.mxu0 %v2179_v10  ;;  %v761_v42 = vld [vmem:[#allocation10 + $0x18] sm:$0xff]  ;;  %v760_v43 = vld [vmem:[#allocation10 + $0x10] sm:$0xff]  ;;  %v758_v45 = vld [vmem:[#allocation10] sm:$0xff] }
  0x80   : > { %1448 = vmatpush3.msra.mxu1 %v2182_v11  ;;  %1427 = vmatprep.subr.mxu0 %v2189_v12 }
  0x81   : > { %1449 = vmatprep.subr.mxu1 %v2192_v13  ;;  %1428 = vmatpush3.msra.mxu0 %v2189_v12 }
  0x82   : > { %1450 = vmatpush3.msra.mxu1 %v2192_v13  ;;  %1429 = vmatprep.subr.mxu0 %v2199_v14 }
  0x83   : > { %1451 = vmatprep.subr.mxu1 %v2202_v15  ;;  %1430 = vmatpush3.msra.mxu0 %v2199_v14 }
  0x84   : > { %1431 = vmatprep.mubr.msk.f32.mxu0 %vm371_vm0, %v359_v16  ;;  %1452 = vmatpush3.msra.mxu1 %v2202_v15 }
  0x85   : > { %1453 = vmatprep.mubr.msk.f32.mxu1 %vm371_vm0, %v359_v16  ;;  %1432 = vmatmul.mubr.msk.f32.vlgmr.msra.gmra.mxu0 %vm371_vm0, %v360_v17 }
  0x86   : > { %1454 = vmatmul.mubr.msk.f32.vlgmr.msra.gmra.mxu1 %vm371_vm0, %v360_v17  ;;  %1434 = vmatprep.mubr.msk.f32.mxu0 %vm371_vm0, %v361_v18 }
  0x87   : > { %1456 = vmatprep.mubr.msk.f32.mxu1 %vm371_vm0, %v361_v18  ;;  %1459 = vmatprep.subr.mxu0 %v370_v19 }
  0x88   : > { %1481 = vmatprep.subr.mxu1 %v370_v19  ;;  %1460 = vmatpush3.msra.mxu0 %v370_v19 }
  0x89   : > { %1482 = vmatpush3.msra.mxu1 %v370_v19  ;;  %1435 = vmatmul.mubr.msk.f32.gmra.mxu0 %vm371_vm0, %v362_v20 }
  0x8a   : > { %1457 = vmatmul.mubr.msk.f32.gmra.mxu1 %vm371_vm0, %v362_v20  ;;  %1461 = vmatprep.subr.mxu0 %v369_v21 }
  0x8b   : > { %1483 = vmatprep.subr.mxu1 %v369_v21  ;;  %1462 = vmatpush3.msra.mxu0 %v369_v21 }
  0x8c   : > { %1484 = vmatpush3.msra.mxu1 %v369_v21  ;;  %1463 = vmatprep.subr.mxu0 %v368_v22 }
  0x8d   : > { %1485 = vmatprep.subr.mxu1 %v368_v22  ;;  %1464 = vmatpush3.msra.mxu0 %v368_v22 }
  0x8e   : > { %1486 = vmatpush3.msra.mxu1 %v368_v22  ;;  %1465 = vmatprep.subr.mxu0 %v367_v23 }
  0x8f   : > { %1487 = vmatprep.subr.mxu1 %v367_v23  ;;  %1466 = vmatpush3.msra.mxu0 %v367_v23 }
  0x90   : > { %1488 = vmatpush3.msra.mxu1 %v367_v23  ;;  %1467 = vmatprep.subr.mxu0 %v366_v24 }
  0x91   : > { %1489 = vmatprep.subr.mxu1 %v366_v24  ;;  %1468 = vmatpush3.msra.mxu0 %v366_v24 }
  0x92   : > { %1490 = vmatpush3.msra.mxu1 %v366_v24  ;;  %1469 = vmatprep.subr.mxu0 %v365_v25 }
  0x93   : > { %1491 = vmatprep.subr.mxu1 %v365_v25  ;;  %1470 = vmatpush3.msra.mxu0 %v365_v25 }
  0x94   : > { %1492 = vmatpush3.msra.mxu1 %v365_v25  ;;  %1471 = vmatprep.subr.mxu0 %v364_v26 }
  0x95   : > { %1493 = vmatprep.subr.mxu1 %v364_v26  ;;  %1472 = vmatpush3.msra.mxu0 %v364_v26 }
  0x96   : > { %1494 = vmatpush3.msra.mxu1 %v364_v26  ;;  %1473 = vmatprep.subr.mxu0 %v363_v27 }
  0x97   : > { %1495 = vmatprep.subr.mxu1 %v363_v27  ;;  %1474 = vmatpush3.msra.mxu0 %v363_v27 }
  0x98   : > { %1496 = vmatpush3.msra.mxu1 %v363_v27  ;;  %1503 = vmatprep.subr.mxu0 %v2133_v0 }
  0x99   : > { %1522 = vmatprep.subr.mxu1 %v2136_v1 }
 0x145   : > { %v1433_v28 = vpop.f32.mrf.mxu0 }
 0x146   : > { %v1455_v29 = vpop.f32.mrf.mxu1 }
 0x147   : > { %v450_v30 = vpop.f32.mrf.mxu0 }
 0x148   : > { %v535_v31 = vpop.f32.mrf.mxu1  ;;  %1475 = vmatprep.mubr.msk.f32.mxu0 %vm371_vm0, %v450_v30 }
 0x149   : > { %1497 = vmatprep.mubr.msk.f32.mxu1 %vm371_vm0, %v535_v31  ;;  %1476 = vmatmul.mubr.msk.f32.vlgmr.msra.gmra.mxu0 %vm371_vm0, %v1433_v28  ;;  %v1436_v32 = vpop.f32.mrf.mxu0 }
 0x14a   : > { %1498 = vmatmul.mubr.msk.f32.vlgmr.msra.gmra.mxu1 %vm371_vm0, %v1455_v29  ;;  %v1458_v33 = vpop.f32.mrf.mxu1  ;;  %1504 = vmatpush3.msra.mxu0 %v2133_v0 }
 0x14b   : > { %1523 = vmatpush3.msra.mxu1 %v2136_v1  ;;  %1505 = vmatprep.subr.mxu0 %v2139_v2  ;;  %v460_v34 = vpop.f32.mrf.mxu0 }
 0x14c   : > { %1524 = vmatprep.subr.mxu1 %v2144_v3  ;;  %1506 = vmatpush3.msra.mxu0 %v2139_v2  ;;  %v545_v35 = vpop.f32.mrf.mxu1 }
 0x14d   : > { %1525 = vmatpush3.msra.mxu1 %v2144_v3  ;;  %1507 = vmatprep.subr.mxu0 %v2149_v4 }
 0x14e   : > { %1526 = vmatprep.subr.mxu1 %v2152_v5  ;;  %1508 = vmatpush3.msra.mxu0 %v2149_v4 }
 0x14f   : > { %1527 = vmatpush3.msra.mxu1 %v2152_v5  ;;  %1478 = vmatprep.mubr.msk.f32.mxu0 %vm371_vm0, %v460_v34 }
 0x150   : > { %1500 = vmatprep.mubr.msk.f32.mxu1 %vm371_vm0, %v545_v35  ;;  %1509 = vmatprep.subr.mxu0 %v2159_v6 }
 0x151   : > { %1528 = vmatprep.subr.mxu1 %v2162_v7  ;;  %1479 = vmatmul.mubr.msk.f32.gmra.mxu0 %vm371_vm0, %v1436_v32 }
 0x152   : > { %1501 = vmatmul.mubr.msk.f32.gmra.mxu1 %vm371_vm0, %v1458_v33  ;;  %1510 = vmatpush3.msra.mxu0 %v2159_v6 }
 0x153   : > { %1529 = vmatpush3.msra.mxu1 %v2162_v7  ;;  %1511 = vmatprep.subr.mxu0 %v2169_v8 }
 0x154   : > { %1530 = vmatprep.subr.mxu1 %v2172_v9  ;;  %1512 = vmatpush3.msra.mxu0 %v2169_v8 }
 0x155   : > { %1531 = vmatpush3.msra.mxu1 %v2172_v9  ;;  %1513 = vmatprep.subr.mxu0 %v2179_v10 }
 0x156   : > { %1532 = vmatprep.subr.mxu1 %v2182_v11  ;;  %1514 = vmatpush3.msra.mxu0 %v2179_v10 }
 0x157   : > { %1533 = vmatpush3.msra.mxu1 %v2182_v11  ;;  %1515 = vmatprep.subr.mxu0 %v2189_v12 }
 0x158   : > { %1534 = vmatprep.subr.mxu1 %v2192_v13  ;;  %1516 = vmatpush3.msra.mxu0 %v2189_v12 }
 0x159   : > { %1535 = vmatpush3.msra.mxu1 %v2192_v13  ;;  %1517 = vmatprep.subr.mxu0 %v2199_v14 }
 0x15a   : > { %1536 = vmatprep.subr.mxu1 %v2202_v15  ;;  %1518 = vmatpush3.msra.mxu0 %v2199_v14 }
 0x15b   : > { %1519 = vmatprep.mubr.msk.f32.mxu0 %vm371_vm0, %v756_v36  ;;  %1537 = vmatpush3.msra.mxu1 %v2202_v15 }
 0x15c   : > { %1538 = vmatprep.mubr.msk.f32.mxu1 %vm371_vm0, %v756_v36  ;;  %1520 = vmatmul.mubr.msk.f32.vlgmr.msra.gmra.mxu0 %vm371_vm0, %v757_v37 }
 0x15d   : > { %1539 = vmatmul.mubr.msk.f32.vlgmr.msra.gmra.mxu1 %vm371_vm0, %v757_v37  ;;  %1541 = vmatprep.subr.mxu0 %v765_v38 }
 0x15e   : > { %1560 = vmatprep.subr.mxu1 %v765_v38  ;;  %1542 = vmatpush3.msra.mxu0 %v765_v38 }
 0x15f   : > { %1561 = vmatpush3.msra.mxu1 %v765_v38  ;;  %1543 = vmatprep.subr.mxu0 %v764_v39 }
 0x160   : > { %1562 = vmatprep.subr.mxu1 %v764_v39  ;;  %1544 = vmatpush3.msra.mxu0 %v764_v39 }
 0x161   : > { %1563 = vmatpush3.msra.mxu1 %v764_v39  ;;  %1545 = vmatprep.subr.mxu0 %v763_v40 }
 0x162   : > { %1564 = vmatprep.subr.mxu1 %v763_v40  ;;  %1546 = vmatpush3.msra.mxu0 %v763_v40 }
 0x163   : > { %1565 = vmatpush3.msra.mxu1 %v763_v40  ;;  %1547 = vmatprep.subr.mxu0 %v762_v41 }
 0x164   : > { %1566 = vmatprep.subr.mxu1 %v762_v41  ;;  %1548 = vmatpush3.msra.mxu0 %v762_v41 }
 0x165   : > { %1567 = vmatpush3.msra.mxu1 %v762_v41  ;;  %1549 = vmatprep.subr.mxu0 %v761_v42 }
 0x166   : > { %1568 = vmatprep.subr.mxu1 %v761_v42  ;;  %1550 = vmatpush3.msra.mxu0 %v761_v42 }
 0x167   : > { %1569 = vmatpush3.msra.mxu1 %v761_v42  ;;  %1551 = vmatprep.subr.mxu0 %v760_v43 }
 0x168   : > { %1570 = vmatprep.subr.mxu1 %v760_v43  ;;  %1552 = vmatpush3.msra.mxu0 %v760_v43 }
 0x169   : > { %1571 = vmatpush3.msra.mxu1 %v760_v43  ;;  %1553 = vmatprep.subr.mxu0 %v759_v44 }
 0x16a   : > { %1572 = vmatprep.subr.mxu1 %v759_v44  ;;  %1554 = vmatpush3.msra.mxu0 %v759_v44 }
 0x16b   : > { %1573 = vmatpush3.msra.mxu1 %v759_v44  ;;  %1555 = vmatprep.subr.mxu0 %v758_v45 }
 0x16c   : > { %1574 = vmatprep.subr.mxu1 %v758_v45  ;;  %1556 = vmatpush3.msra.mxu0 %v758_v45 }
 0x16d   : > { %1575 = vmatpush3.msra.mxu1 %v758_v45 }
 0x209   : > { %v1477_v46 = vpop.f32.mrf.mxu0 }
 0x20a   : > { %v1499_v47 = vpop.f32.mrf.mxu1  ;;  %749 = vst [vmem:[%s332_s29 + $0x8] sm:$0xff] %v1477_v46 }
 0x20b   : > { %753 = vst [vmem:[%s332_s29 + $0x28] sm:$0xff] %v1499_v47  ;;  %v632_v48 = vpop.f32.mrf.mxu0 }
 0x20c   : > { %v729_v49 = vpop.f32.mrf.mxu1  ;;  %748 = vst [vmem:[%s332_s29] sm:$0xff] %v632_v48 }
 0x20d   : > { %752 = vst [vmem:[%s332_s29 + $0x20] sm:$0xff] %v729_v49 }
 0x211   : > { %v1480_v50 = vpop.f32.mrf.mxu0 }
 0x212   : > { %v1502_v51 = vpop.f32.mrf.mxu1  ;;  %751 = vst [vmem:[%s332_s29 + $0x18] sm:$0xff] %v1480_v50 }
 0x213   : > { %755 = vst [vmem:[%s332_s29 + $0x38] sm:$0xff] %v1502_v51  ;;  %v642_v52 = vpop.f32.mrf.mxu0 }
 0x214   : > { %v739_v53 = vpop.f32.mrf.mxu1  ;;  %750 = vst [vmem:[%s332_s29 + $0x10] sm:$0xff] %v642_v52 }
 0x215   : > { %754 = vst [vmem:[%s332_s29 + $0x30] sm:$0xff] %v739_v53 }
 0x21c   : > { %v1521_v54 = vpop.f32.mrf.mxu0 }
 0x21d   : > { %v1540_v55 = vpop.f32.mrf.mxu1 }
 0x21e   : > { %v838_v56 = vpop.f32.mrf.mxu0 }
 0x21f   : > { %v913_v57 = vpop.f32.mrf.mxu1  ;;  %1557 = vmatprep.mubr.msk.f32.mxu0 %vm371_vm0, %v838_v56 }
 0x220   : > { %1576 = vmatprep.mubr.msk.f32.mxu1 %vm371_vm0, %v913_v57  ;;  %1558 = vmatmul.mubr.msk.f32.vlgmr.msra.gmra.mxu0 %vm371_vm0, %v1521_v54 }
 0x221   : > { %1577 = vmatmul.mubr.msk.f32.vlgmr.msra.gmra.mxu1 %vm371_vm0, %v1540_v55 }
 0x222   : > { %1820 = shalt.err (!%p1817_p3)
}
 0x223   : > { %s1821_s26 = scalar_lea.hbm %s2275_s11, 1024  ;;  %s1825_s29 = scalar_lea.hbm %s2358_s5, 3072 }
 0x224   : > { %p1822_p6 = scmp.ne.s32.totalorder %s2275_s11, %s1821_s26  ;;  %p1826_p9 = scmp.lt.s32.totalorder %s2275_s11, %s2358_s5 }
 0x225   : > { %p1827_p2 = scmp.lt.s32.totalorder %s1825_s29, %s1821_s26 }
 0x226   : > { %p1823_p4 = pnand %p1822_p6, %p2380_p11 }
 0x227   : > { %p1828_p0 = por %p1827_p2, %p1826_p9 }
 0x228   : > { %p1824_p8 = pneg %p1823_p4 }
 0x22a   : > { %p1829_p5 = pnand %p1828_p0, %p1824_p8 }
 0x22c   : > { %1832 = shalt.err (!%p1829_p5)
}
 0x22d   : > { %s1919_s8 = smov 128   ;;  %s1920_s30 = smov 8  }
 0x22e   : > { %1597 = dma.vmem_to_hbm [thread:$0]  (%p2380_p11), %s2269_s10, 1024, %s2275_s11, %s1089_s20, %s1919_s8, %s1919_s8, %s1920_s30  }
 0x22f   : > { %s1286_s17 = sshll.u32 %s2114_s14, 5  ;;  %s1326_s26 = sshll.u32 %s1978_s25, 9 }
 0x230   : > { %s339_s7 = scalar_lea.vmem [#allocation12], %s1286_s17  ;;  %s2310_s29 = scalar_lea.hbm %s2359_s6, %s1326_s26 }
 0x231   : > { %s1125_s15 = sshll.u32 %s339_s7, 4  ;;  %s1094_s10 = scalar_lea.sflag [#allocation13], %s2114_s14  ;;  %s2305_s15 = int_to_ptr.vmem [resolvable:$true] %s1125_s15 }
 0x232   : > { %s1833_s25 = scalar_lea.vmem %s2305_s15, 512  ;;  %s1921_s11 = smov [#allocation12]  }
 0x233   : > { %p1834_p7 = scmp.ne.s32.totalorder %s2305_s15, %s1833_s25  ;;  %s1837_s20 = sshll.u32 %s1921_s11, 4  ;;  %s1838_s20 = int_to_ptr.vmem [resolvable:$false] %s1837_s20 }
 0x234   : > { %s1839_s12 = scalar_lea.vmem %s1838_s20, 1024  ;;  %p1840_p13 = scmp.lt.s32.totalorder %s2305_s15, %s1838_s20 }
 0x235   : > { %p1835_p1 = pnand %p1834_p7, %p2380_p11  ;;  %p1841_p10 = scmp.lt.s32.totalorder %s1839_s12, %s1833_s25 }
 0x237   : > { %p1836_p12 = pneg %p1835_p1  ;;  %p1842_p3 = por %p1841_p10, %p1840_p13 }
 0x239   : > { %p1843_p6 = pnand %p1842_p3, %p1836_p12 }
 0x2e0   : > { %v1559_v58 = vpop.f32.mrf.mxu0 }
 0x2e1   : > { %v1578_v59 = vpop.f32.mrf.mxu1  ;;  %1085 = vst [vmem:[%s339_s7 + $0x8] sm:$0xff] %v1559_v58 }
 0x2e2   : > { %1087 = vst [vmem:[%s339_s7 + $0x18] sm:$0xff] %v1578_v59  ;;  %v994_v60 = vpop.f32.mrf.mxu0 }
 0x2e3   : > { %v1075_v61 = vpop.f32.mrf.mxu1  ;;  %1084 = vst [vmem:[%s339_s7] sm:$0xff] %v994_v60 }
 0x2e4   : > { %1086 = vst [vmem:[%s339_s7 + $0x10] sm:$0xff] %v1075_v61 }
 0x2e5   : > { %1846 = shalt.err (!%p1843_p6)
}
 0x2e6   : > { %s1847_s13 = scalar_lea.hbm %s2310_s29, 512  ;;  %s1851_s7 = scalar_lea.hbm %s2359_s6, 1536 }
 0x2e7   : > { %p1848_p4 = scmp.ne.s32.totalorder %s2310_s29, %s1847_s13  ;;  %p1852_p2 = scmp.lt.s32.totalorder %s2310_s29, %s2359_s6 }
 0x2e8   : > { %p1853_p0 = scmp.lt.s32.totalorder %s1851_s7, %s1847_s13 }
 0x2e9   : > { %p1849_p8 = pnand %p1848_p4, %p2380_p11 }
 0x2ea   : > { %p1854_p5 = por %p1853_p0, %p1852_p2 }
 0x2eb   : > { %p1850_p9 = pneg %p1849_p8 }
 0x2ed   : > { %p1855_p7 = pnand %p1854_p5, %p1850_p9 }
 0x2ef   : > { %1858 = shalt.err (!%p1855_p7)
}
 0x2f0   : > { %1598 = dma.vmem_to_hbm [thread:$0]  (%p2380_p11), %s2305_s15, 512, %s2310_s29, %s1094_s10, %s1919_s8, %s1919_s8, %s1920_s30  }
 0x2f1 PF: > { %p1634_p1 = scmp.ge.s32.totalorder %s1909_s24, 2  ;;  %s1140_s27 = sand.u32 1, %s1897_s21  }
 0x2f2   : > { %p2381_p12 = scmp.ne.s32.totalorder %s2367_s28, 0  ;;  %s1141_s25 = scalar_lea.sflag [#allocation4], %s1140_s27 }
 0x2f4   : > { %p1619_p13 = pnand %p1634_p1, %p2381_p12 }
 0x2f6   : > { %p1620_p10 = pneg %p1619_p13 }
 0x2f8   : > { %1888 = dma.done.wait (%p1620_p10), %s1141_s25, 1024  }
 0x2f9   : > { %1890 = vsyncadd (%p1620_p10), %s1141_s25, 4294966272  ;;  %s1150_s11 = scalar_lea.sflag [#allocation13], %s1140_s27 }
 0x2fa   : > { %1892 = dma.done.wait (%p1620_p10), %s1150_s11, 512  }
 0x2fb   : > { %1894 = vsyncadd (%p1620_p10), %s1150_s11, 4294966784  ;;  %p25_p11 = scmp.ge.s32.totalorder %s2056_s16, 5   ;;  %s2382_s21 = smov %s1901_s22 }
 0x2fc   : > { %s2383_s22 = smov %s1905_s23  ;;  %s2384_s23 = smov %s2072_s19 }
 0x2fd   : > { %s2385_s24 = smov %s2056_s16  ;;  %27 = sbr.rel (!%p25_p11) target bundleno = 9 (0x9), region = 118 }
 0x302   :  { %1155 = vsyncpa [#allocation3], 1 }
 0x303   :  { %1157 = vsyncpa [#allocation3 + $0x1], 1 }
 0x304   :  { %1158 = vsyncpa [#allocation6], 1 }
 0x305   :  { %1159 = vsyncpa [#allocation9], 1 }
 0x306   :  { %1160 = vsyncpa [#allocation4], 1 }
 0x307   :  { %1162 = vsyncpa [#allocation4 + $0x1], 1 }
 0x308   :  { %1163 = vsyncpa [#allocation13], 1 }
 0x309   :  { %1165 = vsyncpa [#allocation13 + $0x1], 1 }

</bundles_post_ra>
